<compile_context>
chip_gen: v7x
topology: tpu7x:2x2x1
jax: 0.10.0
libtpu: 0.0.40
codegen_flags: <defaults>
</compile_context>

<pallas_src>
import jax
import jax.numpy as jnp
from jax import lax
from jax.experimental import pallas as pl
from jax.experimental.pallas import tpu as pltpu

EPS = 1e-5  # nn.GroupNorm default


def _make_kernel(*, KH, KW, S, Cin, Cout, OH, OW, A, L, L_out):
    """Builds the fused Conv(KHxKW, stride S) -> GroupNorm(1) -> ReLU kernel."""
    KWC = KW * Cin
    inv_cnt = 1.0 / float(Cout * L)   # TRUE element count (excludes lane padding)
    Lf = float(L)

    def kernel(x_ref, w_ref, p_ref, o_ref):
        # x_ref : (1, S*KW*Cin, A*OW)  stride-collapsed, W-unrolled input planes (matmul dtype)
        #         row = ri*KW*Cin + dj*Cin + ci ; col = a*OW + ow ; value = xpad[ci, a*S+ri, S*ow+dj]
        # w_ref : (KH, Cout, KW*Cin)   per-di weight slabs (matmul dtype)
        # p_ref : (Cout, 3)            packed [conv_bias, gn_gamma, gn_beta] (f32)
        # o_ref : (1, Cout, L_out)     lane-dense output block (L padded to a 128 multiple)

        # --- Conv2d as KH accumulated MXU matmuls over contiguous slices (no im2col) ---
        acc = None
        for di in range(KH):
            ri, qi = di % S, di // S
            slab = x_ref[0, ri * KWC:(ri + 1) * KWC, qi * OW: qi * OW + L]   # (KW*Cin, L)
            d = jnp.dot(w_ref[di], slab, preferred_element_type=jnp.float32)  # (Cout, L) f32
            acc = d if acc is None else acc + d
        y0 = acc                                                             # conv WITHOUT bias

        # Lane-dense store path: pad L up to a 128 multiple with exact zeros.  Because the
        # bias is folded into the shift (below), padded columns contribute 0 to the stats.
        if L_out > L:
            y0 = jnp.concatenate(
                [y0, jnp.zeros((Cout, L_out - L), jnp.float32)], axis=1)      # (Cout, L_out)

        params = p_ref[...]                          # (Cout, 3) f32
        cb = params[:, 0:1]                          # conv bias   (Cout, 1)
        gw = params[:, 1:2]                          # GN gamma    (Cout, 1)
        gb = params[:, 2:3]                          # GN beta     (Cout, 1)

        # --- GroupNorm(num_groups=1) stats with the conv bias folded in analytically ---
        rs = jnp.sum(y0, axis=1, keepdims=True)      # per-channel sums        (Cout, 1)
        ss = jnp.sum(y0 * y0, keepdims=True)         # total sum of squares    (1, 1)
        sum_y = jnp.sum(rs, keepdims=True) + Lf * jnp.sum(cb, keepdims=True)
        sum_y2 = (ss + 2.0 * jnp.sum(cb * rs, keepdims=True)
                  + Lf * jnp.sum(cb * cb, keepdims=True))
        mean = sum_y * inv_cnt
        var = sum_y2 * inv_cnt - mean * mean          # biased variance (matches PyTorch)
        rstd = lax.rsqrt(var + EPS)                   # EUP slot, ~free
        scale = gw * rstd                             # (Cout, 1)
        shift = gb + (cb - mean) * scale              # bias folded into the shift

        # --- normalize + affine + ReLU in a single VPU pass, lane-dense store ---
        o_ref[0] = jnp.maximum(y0 * scale + shift, 0.0).astype(o_ref.dtype)

    return kernel


def down_block_forward(x, conv_w, conv_b, gn_w, gn_b, *, stride, padding,
                       matmul_dtype=jnp.bfloat16):
    """x: [N, Cin, H, W] (NCHW, like PyTorch). Returns [N, Cout, OH, OW].

    matmul_dtype=jnp.bfloat16 (default; MXU-native on v5e/v6e/v7x and halves the HBM stream)
    or None to keep the matmul inputs in the input dtype (f32).  GroupNorm math is f32 always.
    """
    N, Cin, H, W = x.shape
    Cout, Cin2, KH, KW = conv_w.shape
    assert Cin2 == Cin
    S = stride
    Hp, Wp = H + 2 * padding, W + 2 * padding
    OH = (Hp - KH) // S + 1
    OW = (Wp - KW) // S + 1
    L = OH * OW
    L_out = ((L + 127) // 128) * 128                       # lane-dense output width
    A = max(-(-Hp // S), OH + (KH - 1) // S)               # rows per H-stride phase plane
    Hp2 = S * A                                            # padded H so it splits into phases
    cdt = x.dtype if matmul_dtype is None else matmul_dtype

    # Pad (conv padding + a few extra zero rows for the phase split) and cast early so the
    # transformed HBM stream is already in the matmul dtype.
    xp = jnp.pad(x.astype(cdt),
                 ((0, 0), (0, 0), (padding, Hp2 - H - padding), (padding, padding)))

    # W-direction window unroll (expansion ~KW/S, NOT the KH*KW of full im2col):
    cols = jnp.stack(
        [xp[:, :, :, dj: dj + S * (OW - 1) + 1: S] for dj in range(KW)],
        axis=1)                                            # (N, KW, Cin, Hp2, OW)
    # H-direction stride collapse (space-to-depth on rows): h = a*S + ri
    cols = cols.reshape(N, KW, Cin, A, S, OW).transpose(0, 4, 1, 2, 3, 5)
    x_cols = cols.reshape(N, S * KW * Cin, A * OW)         # row = ri*KW*Cin + dj*Cin + ci

    # Per-di weight slabs, column order (dj, ci) to match x_cols rows.
    w3 = conv_w.transpose(2, 0, 3, 1).reshape(KH, Cout, KW * Cin).astype(cdt)
    # Packed per-channel params: one small DMA stream instead of three.
    params = jnp.stack([conv_b, gn_w, gn_b], axis=1).astype(jnp.float32)   # (Cout, 3)

    kernel = _make_kernel(KH=KH, KW=KW, S=S, Cin=Cin, Cout=Cout,
                          OH=OH, OW=OW, A=A, L=L, L_out=L_out)

    out = pl.pallas_call(
        kernel,
        out_shape=jax.ShapeDtypeStruct((N, Cout, L_out), x.dtype),
        grid_spec=pltpu.PrefetchScalarGridSpec(
            num_scalar_prefetch=0,
            grid=(N,),
            in_specs=[
                pl.BlockSpec((1, S * KW * Cin, A * OW), lambda b: (b, 0, 0)),
                pl.BlockSpec((KH, Cout, KW * Cin), lambda b: (0, 0, 0)),
                pl.BlockSpec((Cout, 3), lambda b: (0, 0)),
            ],
            out_specs=pl.BlockSpec((1, Cout, L_out), lambda b: (b, 0, 0)),
        ),
        compiler_params=pltpu.CompilerParams(
            dimension_semantics=("parallel",),      # per-sample blocks shard across v7x's 2 TCs
            vmem_limit_bytes=32 * 1024 * 1024),     # above v5e's 16 MiB scoped default, safe everywhere
    )(x_cols, w3, params)

    # [N, Cout, L_out] -> drop lane padding -> [N, Cout, OH, OW] (cheap layout plumbing)
    return out[:, :, :L].reshape(N, Cout, OH, OW)


if __name__ == "__main__":
    key = jax.random.PRNGKey(0)
    N, Cin, H, W = 2, 4, 16, 16
    Cout, K, stride, padding = 8, 3, 2, 1

    k1, k2, k3, k4, kx = jax.random.split(key, 5)
    fan_in = Cin * K * K
    bound = 1.0 / (fan_in ** 0.5)
    conv_w = jax.random.uniform(k1, (Cout, Cin, K, K), jnp.float32, -bound, bound)
    conv_b = jax.random.uniform(k2, (Cout,), jnp.float32, -bound, bound)
    gn_w = 1.0 + 0.2 * jax.random.normal(k3, (Cout,), jnp.float32)
    gn_b = 0.2 * jax.random.normal(k4, (Cout,), jnp.float32)
    x = jax.random.normal(kx, (N, Cin, H, W), jnp.float32)

    OH = (H + 2 * padding - K) // stride + 1
    OW = (W + 2 * padding - K) // stride + 1

    # Pure-JAX reference (Conv2d -> GroupNorm(1) -> ReLU).
    ref = lax.conv_general_dilated(
        x, conv_w, window_strides=(stride, stride),
        padding=[(padding, padding), (padding, padding)],
        dimension_numbers=("NCHW", "OIHW", "NCHW")) + conv_b.reshape(1, Cout, 1, 1)
    m = jnp.mean(ref, axis=(1, 2, 3), keepdims=True)
    v = jnp.mean((ref - m) ** 2, axis=(1, 2, 3), keepdims=True)
    ref = (ref - m) * lax.rsqrt(v + EPS)
    ref = jnp.maximum(ref * gn_w.reshape(1, Cout, 1, 1) + gn_b.reshape(1, Cout, 1, 1), 0.0)

    # f32 MXU path: matches the f32 reference tightly.
    y32 = down_block_forward(x, conv_w, conv_b, gn_w, gn_b,
                             stride=stride, padding=padding, matmul_dtype=None)
    jax.block_until_ready(y32)
    assert y32.shape == (N, Cout, OH, OW)
    assert float(jnp.max(jnp.abs(y32 - ref))) < 3e-4

    # Default bf16 MXU path (v5e/v6e/v7x-native): looser tolerance (GN stats still f32).
    ybf = down_block_forward(x, conv_w, conv_b, gn_w, gn_b,
                             stride=stride, padding=padding)
    jax.block_until_ready(ybf)
    assert ybf.shape == (N, Cout, OH, OW)
    assert float(jnp.max(jnp.abs(ybf - ref))) < 1e-1

    print("KERNEL_OK")
</pallas_src>

<mosaic_0001>
module attributes {stable_mosaic.version = 11 : i64} {
  func.func @kernel(%arg0: i32, %arg1: memref<1x24x72xf32, #tpu.memory_space<vmem>>, %arg2: memref<3x8x12xf32, #tpu.memory_space<vmem>>, %arg3: memref<8x3xf32, #tpu.memory_space<vmem>>, %arg4: memref<1x8x128xf32, #tpu.memory_space<vmem>>) attributes {dimension_semantics = [#tpu.dimension_semantics<parallel>], iteration_bounds = array<i64: 2>, scalar_prefetch = 0 : i64, scratch_operands = 0 : i64, tpu.core_type = #tpu.core_type<tc>, window_params = [{transform_indices = @transform_0, window_bounds = array<i64: 1, 24, 72>}, {pipeline_mode = #tpu.pipeline_mode<synchronous>, transform_indices = @transform_1, window_bounds = array<i64: 3, 8, 12>}, {pipeline_mode = #tpu.pipeline_mode<synchronous>, transform_indices = @transform_2, window_bounds = array<i64: 8, 3>}, {transform_indices = @transform_3, window_bounds = array<i64: 1, 8, 128>}]} {
    %c0 = arith.constant 0 : index
    %c0_0 = arith.constant 0 : index
    %c0_1 = arith.constant 0 : index
    %0 = vector.load %arg1[%c0, %c0_0, %c0_1] : memref<1x24x72xf32, #tpu.memory_space<vmem>>, vector<1x12x64xf32>
    %1 = vector.shape_cast %0 : vector<1x12x64xf32> to vector<12x64xf32>
    %c0_2 = arith.constant 0 : index
    %c0_3 = arith.constant 0 : index
    %c0_4 = arith.constant 0 : index
    %2 = vector.load %arg2[%c0_2, %c0_3, %c0_4] : memref<3x8x12xf32, #tpu.memory_space<vmem>>, vector<1x8x12xf32>
    %3 = vector.shape_cast %2 : vector<1x8x12xf32> to vector<8x12xf32>
    %cst = arith.constant dense<0.000000e+00> : vector<8x64xf32>
    %4 = tpu.matmul %3, %1, %cst {dimension_numbers = #tpu.dot_dimension_numbers<[1], [0], [0], [1], [0, 0, 1, 1], [], []>} : vector<8x12xf32>, vector<12x64xf32>, vector<8x64xf32> -> vector<8x64xf32>
    %c0_5 = arith.constant 0 : index
    %c12 = arith.constant 12 : index
    %c0_6 = arith.constant 0 : index
    %5 = vector.load %arg1[%c0_5, %c12, %c0_6] : memref<1x24x72xf32, #tpu.memory_space<vmem>>, vector<1x12x64xf32>
    %6 = vector.shape_cast %5 : vector<1x12x64xf32> to vector<12x64xf32>
    %c1 = arith.constant 1 : index
    %c0_7 = arith.constant 0 : index
    %c0_8 = arith.constant 0 : index
    %7 = vector.load %arg2[%c1, %c0_7, %c0_8] : memref<3x8x12xf32, #tpu.memory_space<vmem>>, vector<1x8x12xf32>
    %8 = vector.shape_cast %7 : vector<1x8x12xf32> to vector<8x12xf32>
    %cst_9 = arith.constant dense<0.000000e+00> : vector<8x64xf32>
    %9 = tpu.matmul %8, %6, %cst_9 {dimension_numbers = #tpu.dot_dimension_numbers<[1], [0], [0], [1], [0, 0, 1, 1], [], []>} : vector<8x12xf32>, vector<12x64xf32>, vector<8x64xf32> -> vector<8x64xf32>
    %10 = arith.addf %4, %9 : vector<8x64xf32>
    %c0_10 = arith.constant 0 : index
    %c0_11 = arith.constant 0 : index
    %c8 = arith.constant 8 : index
    %11 = vector.load %arg1[%c0_10, %c0_11, %c8] : memref<1x24x72xf32, #tpu.memory_space<vmem>>, vector<1x12x64xf32>
    %12 = vector.shape_cast %11 : vector<1x12x64xf32> to vector<12x64xf32>
    %c2 = arith.constant 2 : index
    %c0_12 = arith.constant 0 : index
    %c0_13 = arith.constant 0 : index
    %13 = vector.load %arg2[%c2, %c0_12, %c0_13] : memref<3x8x12xf32, #tpu.memory_space<vmem>>, vector<1x8x12xf32>
    %14 = vector.shape_cast %13 : vector<1x8x12xf32> to vector<8x12xf32>
    %cst_14 = arith.constant dense<0.000000e+00> : vector<8x64xf32>
    %15 = tpu.matmul %14, %12, %cst_14 {dimension_numbers = #tpu.dot_dimension_numbers<[1], [0], [0], [1], [0, 0, 1, 1], [], []>} : vector<8x12xf32>, vector<12x64xf32>, vector<8x64xf32> -> vector<8x64xf32>
    %16 = arith.addf %10, %15 : vector<8x64xf32>
    %cst_15 = arith.constant 0.000000e+00 : f32
    %17 = vector.broadcast %cst_15 : f32 to vector<8x64xf32>
    %18 = tpu.concatenate %16, %17 in 1 : vector<8x64xf32>, vector<8x64xf32> -> vector<8x128xf32>
    %c0_16 = arith.constant 0 : index
    %c0_17 = arith.constant 0 : index
    %19 = vector.load %arg3[%c0_16, %c0_17] : memref<8x3xf32, #tpu.memory_space<vmem>>, vector<8x3xf32>
    %20 = vector.extract_strided_slice %19 {offsets = [0, 0], sizes = [8, 1], strides = [1, 1]} : vector<8x3xf32> to vector<8x1xf32>
    %21 = vector.extract_strided_slice %19 {offsets = [0, 1], sizes = [8, 1], strides = [1, 1]} : vector<8x3xf32> to vector<8x1xf32>
    %22 = vector.extract_strided_slice %19 {offsets = [0, 2], sizes = [8, 1], strides = [1, 1]} : vector<8x3xf32> to vector<8x1xf32>
    %cst_18 = arith.constant dense<0.000000e+00> : vector<8xf32>
    %23 = vector.multi_reduction <add>, %18, %cst_18 [1] : vector<8x128xf32> to vector<8xf32>
    %24 = vector.shape_cast %23 : vector<8xf32> to vector<8x1xf32>
    %25 = arith.mulf %18, %18 : vector<8x128xf32>
    %26 = vector.shape_cast %25 : vector<8x128xf32> to vector<1x8x128xf32>
    %cst_19 = arith.constant dense<0.000000e+00> : vector<1xf32>
    %27 = vector.multi_reduction <add>, %26, %cst_19 [1, 2] : vector<1x8x128xf32> to vector<1xf32>
    %28 = vector.shape_cast %27 : vector<1xf32> to vector<1x1x1xf32>
    %29 = vector.extract %28[0, 0, 0] : f32 from vector<1x1x1xf32>
    %30 = vector.broadcast %29 : f32 to vector<1x1xf32>
    %31 = vector.shape_cast %24 : vector<8x1xf32> to vector<1x8x1xf32>
    %cst_20 = arith.constant dense<0.000000e+00> : vector<1xf32>
    %32 = vector.multi_reduction <add>, %31, %cst_20 [1, 2] : vector<1x8x1xf32> to vector<1xf32>
    %33 = vector.shape_cast %32 : vector<1xf32> to vector<1x1x1xf32>
    %34 = vector.extract %33[0, 0, 0] : f32 from vector<1x1x1xf32>
    %35 = vector.broadcast %34 : f32 to vector<1x1xf32>
    %36 = vector.shape_cast %20 : vector<8x1xf32> to vector<1x8x1xf32>
    %cst_21 = arith.constant dense<0.000000e+00> : vector<1xf32>
    %37 = vector.multi_reduction <add>, %36, %cst_21 [1, 2] : vector<1x8x1xf32> to vector<1xf32>
    %38 = vector.shape_cast %37 : vector<1xf32> to vector<1x1x1xf32>
    %39 = vector.extract %38[0, 0, 0] : f32 from vector<1x1x1xf32>
    %40 = vector.broadcast %39 : f32 to vector<1x1xf32>
    %cst_22 = arith.constant 6.400000e+01 : f32
    %41 = vector.broadcast %cst_22 : f32 to vector<1x1xf32>
    %42 = arith.mulf %41, %40 : vector<1x1xf32>
    %43 = arith.addf %35, %42 : vector<1x1xf32>
    %44 = arith.mulf %20, %24 : vector<8x1xf32>
    %45 = vector.shape_cast %44 : vector<8x1xf32> to vector<1x8x1xf32>
    %cst_23 = arith.constant dense<0.000000e+00> : vector<1xf32>
    %46 = vector.multi_reduction <add>, %45, %cst_23 [1, 2] : vector<1x8x1xf32> to vector<1xf32>
    %47 = vector.shape_cast %46 : vector<1xf32> to vector<1x1x1xf32>
    %48 = vector.extract %47[0, 0, 0] : f32 from vector<1x1x1xf32>
    %49 = vector.broadcast %48 : f32 to vector<1x1xf32>
    %cst_24 = arith.constant 2.000000e+00 : f32
    %50 = vector.broadcast %cst_24 : f32 to vector<1x1xf32>
    %51 = arith.mulf %50, %49 : vector<1x1xf32>
    %52 = arith.addf %30, %51 : vector<1x1xf32>
    %53 = arith.mulf %20, %20 : vector<8x1xf32>
    %54 = vector.shape_cast %53 : vector<8x1xf32> to vector<1x8x1xf32>
    %cst_25 = arith.constant dense<0.000000e+00> : vector<1xf32>
    %55 = vector.multi_reduction <add>, %54, %cst_25 [1, 2] : vector<1x8x1xf32> to vector<1xf32>
    %56 = vector.shape_cast %55 : vector<1xf32> to vector<1x1x1xf32>
    %57 = vector.extract %56[0, 0, 0] : f32 from vector<1x1x1xf32>
    %58 = vector.broadcast %57 : f32 to vector<1x1xf32>
    %cst_26 = arith.constant 6.400000e+01 : f32
    %59 = vector.broadcast %cst_26 : f32 to vector<1x1xf32>
    %60 = arith.mulf %59, %58 : vector<1x1xf32>
    %61 = arith.addf %52, %60 : vector<1x1xf32>
    %cst_27 = arith.constant 0.001953125 : f32
    %62 = vector.broadcast %cst_27 : f32 to vector<1x1xf32>
    %63 = arith.mulf %43, %62 : vector<1x1xf32>
    %cst_28 = arith.constant 0.001953125 : f32
    %64 = vector.broadcast %cst_28 : f32 to vector<1x1xf32>
    %65 = arith.mulf %61, %64 : vector<1x1xf32>
    %66 = arith.mulf %63, %63 : vector<1x1xf32>
    %67 = arith.subf %65, %66 : vector<1x1xf32>
    %cst_29 = arith.constant 9.99999974E-6 : f32
    %68 = vector.broadcast %cst_29 : f32 to vector<1x1xf32>
    %69 = arith.addf %67, %68 : vector<1x1xf32>
    %70 = math.rsqrt %69 : vector<1x1xf32>
    %71 = vector.broadcast %70 : vector<1x1xf32> to vector<8x1xf32>
    %72 = arith.mulf %21, %71 : vector<8x1xf32>
    %73 = vector.broadcast %63 : vector<1x1xf32> to vector<8x1xf32>
    %74 = arith.subf %20, %73 : vector<8x1xf32>
    %75 = arith.mulf %74, %72 : vector<8x1xf32>
    %76 = arith.addf %22, %75 : vector<8x1xf32>
    %77 = vector.broadcast %72 : vector<8x1xf32> to vector<8x128xf32>
    %78 = arith.mulf %18, %77 : vector<8x128xf32>
    %79 = vector.broadcast %76 : vector<8x1xf32> to vector<8x128xf32>
    %80 = arith.addf %78, %79 : vector<8x128xf32>
    %cst_30 = arith.constant 0.000000e+00 : f32
    %81 = vector.broadcast %cst_30 : f32 to vector<8x128xf32>
    %82 = arith.maximumf %80, %81 : vector<8x128xf32>
    %c0_31 = arith.constant 0 : index
    %c0_32 = arith.constant 0 : index
    %c0_33 = arith.constant 0 : index
    %83 = vector.load %arg4[%c0_31, %c0_32, %c0_33] : memref<1x8x128xf32, #tpu.memory_space<vmem>>, vector<1x8x128xf32>
    %84 = vector.shape_cast %83 : vector<1x8x128xf32> to vector<8x128xf32>
    %85 = vector.shape_cast %82 : vector<8x128xf32> to vector<1x8x128xf32>
    tpu.vector_store %arg4[%c0_31, %c0_32, %c0_33], %85 {strides = array<i32>} : memref<1x8x128xf32, #tpu.memory_space<vmem>>, vector<1x8x128xf32>,
    return
  }
  func.func @transform_0(%arg0: i32) -> (i32, i32, i32) {
    %c0_i32 = arith.constant 0 : i32
    %c0_i32_0 = arith.constant 0 : i32
    %c0_i32_1 = arith.constant 0 : i32
    return %arg0, %c0_i32, %c0_i32_0 : i32, i32, i32
  }
  func.func @transform_1(%arg0: i32) -> (i32, i32, i32) {
    %c0_i32 = arith.constant 0 : i32
    %c0_i32_0 = arith.constant 0 : i32
    %c0_i32_1 = arith.constant 0 : i32
    %c0_i32_2 = arith.constant 0 : i32
    return %c0_i32, %c0_i32_0, %c0_i32_1 : i32, i32, i32
  }
  func.func @transform_2(%arg0: i32) -> (i32, i32) {
    %c0_i32 = arith.constant 0 : i32
    %c0_i32_0 = arith.constant 0 : i32
    %c0_i32_1 = arith.constant 0 : i32
    return %c0_i32, %c0_i32_0 : i32, i32
  }
  func.func @transform_3(%arg0: i32) -> (i32, i32, i32) {
    %c0_i32 = arith.constant 0 : i32
    %c0_i32_0 = arith.constant 0 : i32
    %c0_i32_1 = arith.constant 0 : i32
    return %arg0, %c0_i32, %c0_i32_0 : i32, i32, i32
  }
}

</mosaic_0001>

<bundles_post_ra>
// kernel: tpu_custom_call.1
= control target key start
LH: loop header
LB: loop body
LE: loop exit
PB: predicated region body
PF: predicated region fallthrough
CT: control target
= control target key end

     0   :  { %8 = vsyncpa [#allocation3], 0  ;;  %s1202_s0 = inlined_call_operand.hbm [shape: f32[2,24,72], index: 0, kind: input, shape index: {}]   ;;  %s1203_s1 = inlined_call_operand.hbm [shape: f32[3,8,12], index: 1, kind: input, shape index: {}]   ;;  %s1204_s2 = inlined_call_operand.vmem [shape: f32[8,3], index: 2, kind: input, shape index: {}]   ;;  %s1205_s3 = inlined_call_operand.hbm [shape: f32[2,8,128], index: 3, kind: output, shape index: {}]  }
   0x1   :  { %10 = vsyncpa [#allocation3 + $0x1], 0 }
   0x2   :  { %11 = vsyncpa [#allocation6], 0 }
   0x3   :  { %12 = vsyncpa [#allocation4], 0 }
   0x4   :  { %14 = vsyncpa [#allocation4 + $0x1], 0  ;;  %s961_s12 = smov 0   ;;  %s963_s13 = smov 0  }
   0x5   :  { %s965_s14 = smov 0   ;;  %s967_s15 = smov 0  }
   0x6 LB: > { %s982_s16 = sadd.s32 4294967295, %s925_s15   ;;  %s643_s17 = sadd.s32 4294967294, %s925_s15   ;;  %s925_s15 = sphi %s967_s15, %s1227_s15   ;;  %s921_s14 = sphi %s965_s14, %s1226_s14   ;;  %s917_s13 = sphi %s963_s13, %s1225_s13   ;;  %s913_s12 = sphi %s961_s12, %s1224_s12  }
   0x7   : > { %p40_p0 = scmp.ne.s32.totalorder %s917_s13, %s913_s12  ;;  %p1206_p1 = scmp.eq.s32.totalorder %s982_s16, 0 }
   0x8   : > { %p112_p3 = scmp.eq.s32.totalorder %s643_s17, 1  ;;  %p644_p5 = scmp.ge.s32.totalorder %s925_s15, 1 }
   0x9   : > { %p991_p4 = por %p1206_p1, %p40_p0  ;;  %p119_p7 = scmp.lt.s32.totalorder %s925_s15, 3 }
   0xa   : > { %p996_p6 = por %p112_p3, %p40_p0  ;;  %s927_s21 = smov [#allocation5]  }
   0xb   : > { %s1209_s18 = scalar_select %p991_p4, 1, 0 }
   0xc   : > { %s1210_s19 = scalar_select %p996_p6, 1, 0 }
   0xd   : > { %p1001_p8 = pnand %p644_p5, %p119_p7  ;;  %s131_s22 = sshll.u32 %s927_s21, 4  ;;  %s1005_s22 = int_to_ptr.vmem [resolvable:$true] %s131_s22 }
   0xe   : > { %s1017_s24 = sadd.s32 1, %s925_s15   ;;  %s27_s25 = sadd.s32 1, %s921_s14 }
   0xf   : > { %s1211_s20 = scalar_select %p1001_p8, 1, 0 }
  0x10   : > { %p727_p9 = pneg %p1001_p8  ;;  %s24_s26 = ssub.s32 %s925_s15, %s1017_s24 }
  0x11   : > { %s797_s29 = scalar_lea.hbm %s1203_s1, 384 }
  0x12   : > { %p1012_p11 = pnand %p727_p9, %p1206_p1  ;;  %p798_p12 = scmp.ne.s32.totalorder %s1203_s1, %s797_s29 }
  0x13   : > { %p804_p5 = scmp.lt.u32.totalorder %s797_s29, %s1203_s1 }
  0x14   : > { %p799_p13 = pneg %p1012_p11 }
  0x16   : > { %p800_p0 = pnand %p799_p13, %p798_p12 }
  0x18   : > { %p801_p3 = pneg %p800_p0 }
  0x1a   : > { %p806_p7 = pnand %p804_p5, %p801_p3 }
  0x1c   : > { %809 = shalt.err (!%p806_p7)
}
  0x1d   : > { %s810_s7 = scalar_lea.vmem %s1005_s22, 384  ;;  %p818_p2 = scmp.lt.s32.totalorder %s1005_s22, %s1005_s22 }
  0x1e   : > { %p811_p9 = scmp.ne.s32.totalorder %s1005_s22, %s810_s7  ;;  %p819_p6 = scmp.lt.s32.totalorder %s810_s7, %s810_s7 }
  0x20   : > { %p813_p10 = pnand %p811_p9, %p799_p13  ;;  %p820_p4 = por %p819_p6, %p818_p2 }
  0x22   : > { %p814_p1 = pneg %p813_p10 }
  0x24   : > { %p821_p8 = pnand %p820_p4, %p814_p1 }
  0x26   : > { %824 = shalt.err (!%p821_p8)
}
  0x27   : > { %s928_s8 = smov 128   ;;  %s929_s9 = smov 8  }
  0x28   : > { %730 = dma.hbm_to_vmem [thread:$0]  (!%p1012_p11), %s1203_s1, 384, %s1005_s22, [#allocation6], %s928_s8, %s928_s8, %s929_s9  }
  0x29   : > { %p25_p1 = scmp.eq.s32.totalorder %s24_s26, 0  ;;  %p34_p2 = scmp.ne.s32.totalorder %s921_s14, %s917_s13 }
  0x2a   : > { %p35_p4 = scmp.eq.s32.totalorder %s925_s15, 0  ;;  %p740_p6 = scmp.lt.s32.totalorder %s925_s15, 2 }
  0x2b   : > { %s1051_s17 = scalar_select %p25_p1, %s921_s14, %s27_s25  }
  0x2c   : > { %p36_p8 = por %p35_p4, %p34_p2  ;;  %p1213_p10 = scmp.eq.s32.totalorder %s982_s16, 1 }
  0x2d   : > { %s148_s23 = sand.u32 1, %s921_s14   ;;  %s707_s27 = smul.u32 384, %s925_s15 }
  0x2e   : > { %p1055_p12 = por %p1213_p10, %p34_p2  ;;  %s706_s28 = smul.u32 24, %s148_s23 }
  0x2f   : > { %p1061_p13 = pnand %p740_p6, %p36_p8  ;;  %s1068_s25 = scalar_lea.hbm %s1202_s0, %s707_s27 }
  0x30   : > { %s152_s30 = scalar_lea.vmem [#allocation2], %s706_s28  ;;  %s1072_s5 = scalar_lea.sflag [#allocation3], %s148_s23 }
  0x31   : > { %s159_s4 = sshll.u32 %s152_s30, 4  ;;  %s825_s6 = scalar_lea.hbm %s1068_s25, 384  ;;  %s1070_s4 = int_to_ptr.vmem [resolvable:$true] %s159_s4 }
  0x32   : > { %p826_p11 = scmp.ne.s32.totalorder %s1068_s25, %s825_s6  ;;  %p827_p0 = pneg %p1061_p13 }
  0x33   : > { %s830_s11 = scalar_lea.hbm %s1202_s0, 768  ;;  %p831_p7 = scmp.lt.u32.totalorder %s1068_s25, %s1202_s0 }
  0x34   : > { %p828_p3 = pnand %p827_p0, %p826_p11  ;;  %p832_p9 = scmp.lt.u32.totalorder %s830_s11, %s825_s6 }
  0x35   : > { %p834_p2 = scmp.lt.u32.totalorder %s825_s6, %s1068_s25 }
  0x36   : > { %p829_p5 = pneg %p828_p3  ;;  %p833_p1 = por %p832_p9, %p831_p7 }
  0x38   : > { %p835_p4 = por %p834_p2, %p833_p1 }
  0x3a   : > { %p836_p6 = pnand %p835_p4, %p829_p5 }
  0x3c   : > { %839 = shalt.err (!%p836_p6)
}
  0x3d   : > { %s840_s23 = scalar_lea.vmem %s1070_s4, 384  ;;  %s930_s28 = smov [#allocation2]  }
  0x3e   : > { %p841_p8 = scmp.ne.s32.totalorder %s1070_s4, %s840_s23  ;;  %s845_s26 = sshll.u32 %s930_s28, 4  ;;  %s846_s26 = int_to_ptr.vmem [resolvable:$false] %s845_s26 }
  0x3f   : > { %s847_s30 = scalar_lea.vmem %s846_s26, 768  ;;  %p848_p3 = scmp.lt.s32.totalorder %s1070_s4, %s846_s26 }
  0x40   : > { %p843_p10 = pnand %p841_p8, %p827_p0  ;;  %p849_p7 = scmp.lt.s32.totalorder %s847_s30, %s840_s23 }
  0x42   : > { %p844_p11 = pneg %p843_p10  ;;  %p850_p9 = por %p849_p7, %p848_p3 }
  0x44   : > { %p851_p1 = pnand %p850_p9, %p844_p11 }
  0x46   : > { %854 = shalt.err (!%p851_p1)
}
  0x47   : > { %734 = dma.hbm_to_vmem [thread:$0]  (!%p1061_p13), %s1068_s25, 384, %s1070_s4, %s1072_s5, %s928_s8, %s928_s8, %s929_s9  }
  0x48   : > { %p1216_p0 = scmp.ne.s32.totalorder %s1211_s20, 0 }
  0x49   : > { %s1106_s6 = sand.u32 (!%p1216_p0), 1, %s917_s13   ;;  %p1217_p5 = scmp.ne.s32.totalorder (!%p1216_p0), %s1209_s18, 0 }
  0x4a   : > { %171 = sbr.rel (%p1216_p0) target bundleno = 1185 (0x4a1), region = 32  ;;  %s174_s10 = scalar_lea.sflag (!%p1216_p0), [#allocation3], %s1106_s6 }
  0x4b   : > { %s708_s7 = smul.u32 (!%p1216_p0), 24, %s1106_s6 }
  0x4d   : > { %s177_s11 = scalar_lea.vmem (!%p1216_p0), [#allocation2], %s708_s7 }
  0x51   : > { %900 = dma.done.wait (%p1217_p5), %s174_s10, 384  }
  0x52   : > { %902 = vsyncadd (%p1217_p5), %s174_s10, 4294966912  ;;  %p1218_p2 = scmp.eq.s32.totalorder %s982_s16, 0 }
  0x54   : > { %904 = dma.done.wait (%p1218_p2), [#allocation6], 384   ;;  %p1219_p13 = pmov %p1218_p2 }
  0x55   : > { %v931_v0 = vmov 0.0|0.0   ;;  %vm932_vm0 = vmmov 0   ;;  %v933_v1 = vmov 0.0   ;;  %vm215_vm1 = vcmask 1043456   ;;  %v204_v2 = vld [vmem:[%s177_s11] sm:$0xff]  ;;  %v207_v7 = vld [vmem:[%s177_s11 + $0xc] sm:$0xff] }
  0x56   : > { %906 = vsyncadd (%p1219_p13), [#allocation6], 4294966912  ;;  %695 = vmatprep.subr.bf16.mxu0 %v931_v0  ;;  %691 = vmatprep.subr.bf16.mxu1 %v931_v0  ;;  %v205_v3 = vld [vmem:[%s177_s11 + $0x8] sm:$0xf]  ;;  %vm934_vm2 = vmmov 1   ;;  %s935_s18 = smov 120  }
  0x57   : > { %681 = vmatprep.mubr.msk.f32.mxu0 %vm932_vm0, %v933_v1  ;;  %674 = vmatprep.mubr.msk.f32.mxu1 %vm932_vm0, %v933_v1  ;;  %vm1120_vm3 = vmpackc.low %vm215_vm1, %vm934_vm2  ;;  %v787_v5 = vpack.i.bf16 %v205_v3, %v204_v2  ;;  %v696_v6 = vpack.c.bf16 %v205_v3, %v204_v2  ;;  %v208_v8 = vld [vmem:[%s177_s11 + $0x14] sm:$0xf]  ;;  %vm211_vm4 = vcmask 97280   ;;  %v210_v11 = vld [vmem:[#allocation5 + $0x8] sm:$0xff]  ;;  %vm465_vm5 = vcmask 7168   ;;  %s937_s27 = smov 127  }
  0x58   : > { %v692_v9 = vpack.c.bf16 %v208_v8, %v207_v7  ;;  %v206_v10 = vld [vmem:[#allocation5] sm:$0xff]  ;;  %v366_v16 = vld [vmem:[#allocation5 + $0x10] sm:$0xff]  ;;  %vm449_vm6 = vcmask 523264   ;;  %v936_v40 = vmov 1   ;;  %s939_s22 = smov 2   ;;  %s650_s23 = sshll.u32 %s1106_s6, 3 }
  0x59   : > { %788 = vrot.lane.b32.xlu0 %v787_v5, %s935_s18  ;;  %698 = vmatpush3.bf16.msk.msra.mxu0 %vm1120_vm3, %v696_v6  ;;  %v1134_v17 = vld [vmem:[%s1204_s2] sm:$0xff]  ;;  %s658_s28 = sshll.u32 %s982_s16, 7  ;;  %s203_s26 = scalar_lea.vmem [#allocation7], %s650_s23 }
  0x5a   : > { %699 = vmatprep.subr.bf16.mxu0 %v931_v0  ;;  %694 = vmatpush3.bf16.msk.msra.mxu1 %vm1120_vm3, %v692_v9  ;;  %v477_v18 = vsel %vm465_vm5, %v1134_v17, 0.0  ;;  %v504_v32 = vmul.f32 %v1134_v17, %v1134_v17  ;;  %s563_s30 = sshll.u32 %s203_s26, 4  ;;  %s1158_s11 = scalar_lea.hbm %s1205_s3, %s658_s28  ;;  %s1160_s30 = int_to_ptr.vmem [resolvable:$true] %s563_s30 }
  0x5b   : > { %478 = vadd.xlane.f32.xlu1 %v477_v18  ;;  %s550_s18 = scalar_lea.sflag [#allocation4], %s1106_s6  ;;  %s855_s20 = scalar_lea.vmem %s1160_s30, 128 }
  0x5c   : > { %682 = vmatmul.mubr.msk.f32.vlgmr.msra.gmra.mrb[0].mxu0 %vm211_vm4, %v206_v10  ;;  %v505_v36 = vsel %vm465_vm5, %v504_v32, 0.0  ;;  %792 = vset.pattern.permute.xlu1 %v936_v40  ;;  %p856_p4 = scmp.ne.s32.totalorder %s1160_s30, %s855_s20  ;;  %s940_s16 = smov [#allocation7]  }
  0x5d   : > { %688 = vmatprep.mubr.msk.f32.mxu0 %vm932_vm0, %v933_v1  ;;  %675 = vmatmul.mubr.msk.f32.vlgmr.msra.gmra.mrb[0].mxu1 %vm211_vm4, %v210_v11  ;;  %s859_s8 = sshll.u32 %s940_s16, 4  ;;  %s860_s8 = int_to_ptr.vmem [resolvable:$false] %s859_s8 }
  0x5e   : > { %p857_p6 = pnand %p856_p4, %p1055_p12  ;;  %p862_p10 = scmp.lt.s32.totalorder %s1160_s30, %s860_s8 }
  0x60   : > { %p858_p8 = pneg %p857_p6 }
  0xcb   : > { %v789_v12 = vpop.permute.xlu0 %788 }
  0xcc   : > { %v791_v13 = vunpack.i.h.bf16 %v789_v12  ;;  %v790_v14 = vunpack.i.l.bf16 %v789_v12 }
  0xce   : > { %v700_v15 = vpack.c.bf16 %v791_v13, %v790_v14 }
  0xd0   : > { %702 = vmatpush3.bf16.msk.msra.mxu0 %vm1120_vm3, %v700_v15 }
  0xd3   : > { %689 = vmatmul.mubr.msk.f32.vlgmr.msra.gmra.mrb[0].mxu0 %vm211_vm4, %v366_v16 }
  0xe8   : > { %v479_v26 = vpop.xlane.xlu1 %478 }
  0xe9   : > { %v480_v41 = vrot.slane %v479_v26, 4 }
  0xeb   : > { %v481_v42 = vadd.f32 %v480_v41, %v479_v26 }
  0xed   : > { %v482_v43 = vrot.slane %v481_v42, 2 }
  0xef   : > { %v483_v48 = vadd.f32 %v482_v43, %v481_v42 }
  0xf1   : > { %v484_v54 = vrot.slane %v483_v48, 1 }
  0xf3   : > { %v485_v61 = vadd.f32 %v484_v54, %v483_v48 }
 0x130   : > { %v285_v19 = vpop.f32.mrb[0].mxu1 }
 0x131   : > { %v676_v20 = vpop.f32.mrb[1].mxu1 }
 0x1a6   : > { %v444_v21 = vpop.f32.mrb[0].mxu0 }
 0x1a7   : > { %v703_v22 = vadd.f32 %v444_v21, %v285_v19  ;;  %v690_v23 = vpop.f32.mrb[1].mxu0 }
 0x1a8   : > { %v938_v23 = vmov 2  }
 0x1a9   : > { %v1138_v24 = vsel %vm449_vm6, %v703_v22, 0.0  ;;  %794 = vset.pattern.permute.xlu0 %v938_v23 }
 0x1aa   : > { %452 = vadd.xlane.f32.xlu0 %v1138_v24  ;;  %v454_v25 = vmul.f32 %v1138_v24, %v1138_v24 }
 0x1ac   : > { %455 = vadd.xlane.f32.xlu1 %v454_v25 }
 0x237   : > { %v453_v27 = vpop.xlane.xlu0 %452 }
 0x238   : > { %v490_v28 = vmul.f32 %v453_v27, %v1134_v17  ;;  %v466_v29 = vsel %vm465_vm5, %v453_v27, 0.0 }
 0x239   : > { %467 = vadd.xlane.f32.xlu1 %v466_v29  ;;  %v456_v30 = vpop.xlane.xlu1 %455 }
 0x23a   : > { %v457_v31 = vrot.slane %v456_v30, 4  ;;  %v491_v34 = vsel %vm465_vm5, %v490_v28, 0.0 }
 0x23c   : > { %v458_v33 = vadd.f32 %v457_v31, %v456_v30 }
 0x23d   : > { %492 = vadd.xlane.f32.xlu1 %v491_v34 }
 0x23e   : > { %v459_v35 = vrot.slane %v458_v33, 2 }
 0x240   : > { %v460_v37 = vadd.f32 %v459_v35, %v458_v33 }
 0x241   : > { %506 = vadd.xlane.f32.xlu1 %v505_v36 }
 0x242   : > { %v461_v38 = vrot.slane %v460_v37, 1 }
 0x244   : > { %v462_v39 = vadd.f32 %v461_v38, %v460_v37 }
 0x246   : > { %709 = vpush %v462_v39 }
 0x277   : > { %s710_s9 = spop %709 }
 0x278   : > { %v464_v10 = vstv %s710_s9  ;;  %s861_s9 = scalar_lea.vmem %s860_s8, 256 }
 0x279   : > { %p863_p11 = scmp.lt.s32.totalorder %s861_s9, %s855_s20 }
 0x27b   : > { %p864_p3 = por %p863_p11, %p862_p10 }
 0x27d   : > { %p865_p7 = pnand %p864_p3, %p858_p8 }
 0x2c6   : > { %v468_v44 = vpop.xlane.xlu1 %467 }
 0x2c7   : > { %v469_v45 = vrot.slane %v468_v44, 4 }
 0x2c9   : > { %v470_v46 = vadd.f32 %v469_v45, %v468_v44 }
 0x2ca   : > { %v493_v47 = vpop.xlane.xlu1 %492 }
 0x2cb   : > { %v471_v49 = vrot.slane %v470_v46, 2  ;;  %v494_v50 = vrot.slane %v493_v47, 4 }
 0x2cd   : > { %v495_v51 = vadd.f32 %v494_v50, %v493_v47  ;;  %v472_v52 = vadd.f32 %v471_v49, %v470_v46 }
 0x2ce   : > { %v507_v53 = vpop.xlane.xlu1 %506 }
 0x2cf   : > { %v496_v55 = vrot.slane %v495_v51, 2  ;;  %v508_v56 = vrot.slane %v507_v53, 4  ;;  %v473_v57 = vrot.slane %v472_v52, 1 }
 0x2d1   : > { %v509_v58 = vadd.f32 %v508_v56, %v507_v53  ;;  %v474_v59 = vadd.f32 %v473_v57, %v472_v52  ;;  %v497_v60 = vadd.f32 %v496_v55, %v495_v51 }
 0x2d3   : > { %v510_v62 = vrot.slane %v509_v58, 2  ;;  %711 = vpush %v474_v59  ;;  %v498_v63 = vrot.slane %v497_v60, 1 }
 0x2d4   : > { %713 = vpush %v485_v61 }
 0x2d5   : > { %v499_v0 = vadd.f32 %v498_v63, %v497_v60  ;;  %v511_v1 = vadd.f32 %v510_v62, %v509_v58 }
 0x2d7   : > { %715 = vpush %v499_v0  ;;  %v512_v2 = vrot.slane %v511_v1, 1 }
 0x2d9   : > { %v513_v3 = vadd.f32 %v512_v2, %v511_v1 }
 0x2db   : > { %717 = vpush %v513_v3 }
 0x304   : > { %s712_s29 = spop %711 }
 0x305   : > { %s714_s25 = spop %713  ;;  %v476_v6 = vstv %s712_s29 }
 0x306   : > { %v487_v4 = vstv %s714_s25 }
 0x307   : > { %v488_v5 = vmul.f32 64.0, %v487_v4 }
 0x308   : > { %s716_s4 = spop %715 }
 0x309   : > { %v501_v7 = vstv %s716_s4  ;;  %v489_v8 = vadd.f32 %v488_v5, %v476_v6 }
 0x30a   : > { %v502_v9 = vmul.f32 2.0, %v501_v7 }
 0x30b   : > { %v518_v12 = vmul.f32 0.001953125, %v489_v8 }
 0x30c   : > { %s718_s5 = spop %717  ;;  %v503_v13 = vadd.f32 %v502_v9, %v464_v10 }
 0x30d   : > { %v515_v11 = vstv %s718_s5  ;;  %v520_v16 = vmul.f32 %v518_v12, %v518_v12  ;;  %v525_v25 = vsub.f32 %v1134_v17, %v518_v12 }
 0x30e   : > { %v516_v14 = vmul.f32 64.0, %v515_v11 }
 0x310   : > { %v517_v15 = vadd.f32 %v516_v14, %v503_v13 }
 0x312   : > { %v519_v18 = vmul.f32 0.001953125, %v517_v15 }
 0x314   : > { %v521_v19 = vsub.f32 %v519_v18, %v520_v16 }
 0x316   : > { %v522_v20 = vadd.f32 1e-05, %v521_v19 }
 0x318   : > { %795 = vrsqrt.f32 %v522_v20 }
 0x322   : > { %v796_v21 = vpop.eup %795 }
 0x323   : > { %v524_v22 = vmul.f32 %v796_v21, %v1134_v17 }
 0x325   : > { %527 = vrot.lane.b32.xlu1 %v524_v22, %s937_s27 }
 0x329   : > { %537 = vperm.xlu1 %792, %v524_v22  }
 0x32d   : > { %793 = vset.pattern.permute.xlu1 %v938_v23 }
 0x397   : > { %v528_v26 = vpop.permute.xlu1 %527 }
 0x398   : > { %v530_v27 = vmul.f32 %v528_v26, %v525_v25 }
 0x39a   : > { %532 = vrot.lane.b32.xlu0 %v530_v27, %s939_s22 }
 0x3a8   : > { %v538_v30 = vpop.permute.xlu1 %537 }
 0x3a9   : > { %v540_v31 = vmul.f32 %v538_v30, %v1138_v24 }
 0x40c   : > { %v533_v28 = vpop.permute.xlu0 %532 }
 0x40d   : > { %v535_v29 = vadd.f32 %v533_v28, %v1134_v17 }
 0x40f   : > { %543 = vperm.xlu1 %793, %v535_v29  }
 0x48e   : > { %v544_v32 = vpop.permute.xlu1 %543 }
 0x48f   : > { %v546_v33 = vadd.f32 %v544_v32, %v540_v31 }
 0x491   : > { %v547_v34 = vmax.f32 %v546_v33, 0.0 }
 0x493   : > { %548 = vst [vmem:[%s203_s26] sm:$0xff] %v547_v34 }
 0x494   : > { %868 = shalt.err (!%p865_p7)
}
 0x495   : > { %s869_s6 = scalar_lea.hbm %s1158_s11, 128  ;;  %s873_s4 = scalar_lea.hbm %s1205_s3, 256 }
 0x496   : > { %p870_p9 = scmp.ne.s32.totalorder %s1158_s11, %s869_s6  ;;  %p874_p5 = scmp.lt.u32.totalorder %s1158_s11, %s1205_s3 }
 0x497   : > { %p875_p2 = scmp.lt.u32.totalorder %s873_s4, %s869_s6  ;;  %p877_p4 = scmp.lt.u32.totalorder %s869_s6, %s1158_s11 }
 0x498   : > { %p871_p1 = pnand %p870_p9, %p1055_p12 }
 0x499   : > { %p876_p13 = por %p875_p2, %p874_p5 }
 0x49a   : > { %p872_p0 = pneg %p871_p1 }
 0x49b   : > { %p878_p6 = por %p877_p4, %p876_p13 }
 0x49d   : > { %p879_p8 = pnand %p878_p6, %p872_p0 }
 0x49f   : > { %882 = shalt.err (!%p879_p8)
}
 0x4a0   : > { %725 = dma.vmem_to_hbm [thread:$0]  (%p1055_p12), %s1160_s30, 128, %s1158_s11, %s550_s18  }
 0x4a1 PF: > { %s575_s22 = sand.u32 1, %s913_s12   ;;  %p1222_p10 = scmp.ne.s32.totalorder %s1210_s19, 0 }
 0x4a2   : > { %p1223_p11 = scmp.ge.s32.totalorder %s925_s15, 2  ;;  %s576_s23 = scalar_lea.sflag [#allocation4], %s575_s22 }
 0x4a4   : > { %p736_p3 = pnand %p1223_p11, %p1222_p10 }
 0x4a6   : > { %908 = dma.done.wait (!%p736_p3), %s576_s23, 128  }
 0x4a7   : > { %910 = vsyncadd (!%p736_p3), %s576_s23, 4294967168  ;;  %p17_p7 = scmp.ge.s32.totalorder %s1017_s24, 4   ;;  %s1224_s12 = smov %s917_s13 }
 0x4a8   : > { %s1225_s13 = smov %s921_s14  ;;  %s1226_s14 = smov %s1051_s17 }
 0x4a9   : > { %s1227_s15 = smov %s1017_s24  ;;  %19 = sbr.rel (!%p17_p7) target bundleno = 6 (0x6), region = 83 }
 0x4b0   :  { %581 = vsyncpa [#allocation3], 1 }
 0x4b1   :  { %583 = vsyncpa [#allocation3 + $0x1], 1 }
 0x4b2   :  { %584 = vsyncpa [#allocation6], 1 }
 0x4b3   :  { %585 = vsyncpa [#allocation4], 1 }
 0x4b4   :  { %587 = vsyncpa [#allocation4 + $0x1], 1 }

</bundles_post_ra>
